<compile_context>
chip_gen: v6e
topology: v6e:2x2x1
jax: 0.10.0
libtpu: 0.0.40
codegen_flags: <defaults>
</compile_context>

<pallas_src>
import jax
import jax.numpy as jnp
from jax import lax
from jax.experimental import pallas as pl
from jax.experimental.pallas import tpu as pltpu


def _round_up(x, m):
    return ((x + m - 1) // m) * m


def _embed_layernorm_kernel(ids_ref, word_emb_hbm, gamma_ref, beta_ref,
                            out_ref, gather_buf, sem):
    """One grid step = one tile of T tokens.

    ids_ref      : (N_pad,) int32 token ids, scalar-prefetched into SMEM.
    word_emb_hbm : (V, H) embedding table left in HBM (memory_space=pl.ANY).
    gamma_ref    : (1, H) LayerNorm weight (VMEM resident, constant index_map).
    beta_ref     : (1, H) LayerNorm bias.
    out_ref      : (T, H) output tile (sublane/lane dense).
    gather_buf   : (T, H) VMEM scratch receiving the gathered rows.
    sem          : DMA semaphore shared by the T row-gather copies.
    """
    T = gather_buf.shape[0]
    base = pl.program_id(0) * T

    # Issue all T row-gather DMAs; they are all in flight concurrently so the
    # gather phase is bandwidth-bound rather than latency-bound.
    @pl.loop(0, T)
    def _(r):
        tok = ids_ref[base + r]
        pltpu.make_async_copy(
            word_emb_hbm.at[pl.ds(tok, 1), :],
            gather_buf.at[pl.ds(r, 1), :],
            sem,
        ).start()

    # Wait for all of them (per-row waits; descriptor shapes match the starts,
    # source index is irrelevant for the wait).
    @pl.loop(0, T)
    def _(r):
        pltpu.make_async_copy(
            word_emb_hbm.at[pl.ds(0, 1), :],
            gather_buf.at[pl.ds(r, 1), :],
            sem,
        ).wait()

    # LayerNorm over hidden: biased variance, eps=1e-12 (matches torch).
    x = gather_buf[...].astype(jnp.float32)                   # (T, H)
    mean = jnp.mean(x, axis=-1, keepdims=True)                 # (T, 1)
    xc = x - mean
    var = jnp.mean(xc * xc, axis=-1, keepdims=True)            # (T, 1)
    inv = lax.rsqrt(var + 1e-12)
    y = xc * inv * gamma_ref[...] + beta_ref[...]              # (1,H) broadcast
    # Dropout is identity in eval mode (nn.Dropout with training=False).
    out_ref[...] = y.astype(out_ref.dtype)


def bert_embeddings_dense(input_ids, word_emb, gamma, beta, *,
                          tokens_per_tile=256):
    """input_ids: (B, S) int; word_emb: (V, H) f32; gamma/beta: (H,) f32."""
    B, S = input_ids.shape
    V, H = word_emb.shape
    N = B * S

    # Token tile: multiple of 8 (sublane dense), capped by padded token count.
    T = min(_round_up(tokens_per_tile, 8), _round_up(N, 8))
    N_pad = _round_up(N, T)
    num_tiles = N_pad // T

    ids_flat = input_ids.reshape(N).astype(jnp.int32)
    if N_pad != N:
        # Pad with token id 0 (padding row); padded outputs are sliced off.
        ids_flat = jnp.concatenate(
            [ids_flat, jnp.zeros((N_pad - N,), dtype=jnp.int32)])

    gamma2d = gamma.reshape(1, H).astype(jnp.float32)
    beta2d = beta.reshape(1, H).astype(jnp.float32)

    grid_spec = pltpu.PrefetchScalarGridSpec(
        num_scalar_prefetch=1,              # ids land in SMEM (used for gather)
        grid=(num_tiles,),
        in_specs=[
            pl.BlockSpec(memory_space=pl.ANY),            # word_emb stays in HBM
            pl.BlockSpec((1, H), lambda t, ids: (0, 0)),  # gamma (resident)
            pl.BlockSpec((1, H), lambda t, ids: (0, 0)),  # beta  (resident)
        ],
        out_specs=pl.BlockSpec((T, H), lambda t, ids: (t, 0)),
        scratch_shapes=[
            pltpu.VMEM((T, H), word_emb.dtype),           # gathered rows
            pltpu.SemaphoreType.DMA,                      # shared gather sem
        ],
    )

    out_flat = pl.pallas_call(
        _embed_layernorm_kernel,
        out_shape=jax.ShapeDtypeStruct((N_pad, H), jnp.float32),
        grid_spec=grid_spec,
        compiler_params=pltpu.CompilerParams(
            dimension_semantics=("parallel",)),           # token tiles independent
    )(ids_flat, word_emb, gamma2d, beta2d)

    return out_flat[:N].reshape(B, S, H)


def _reference(input_ids, word_emb, gamma, beta):
    x = word_emb[input_ids]                                   # (B, S, H)
    mean = jnp.mean(x, axis=-1, keepdims=True)
    var = jnp.mean((x - mean) ** 2, axis=-1, keepdims=True)
    return (x - mean) * lax.rsqrt(var + 1e-12) * gamma + beta


if __name__ == "__main__":
    # Small config consistent with the module:
    #   vocab_size=64, hidden_size=32, max_position_embeddings=16,
    #   type_vocab_size=2, batch=2, seq=8
    V, H, P, T = 64, 32, 16, 2
    B, S = 2, 8

    key = jax.random.PRNGKey(0)
    k_w, k_p, k_t, k_ids, k_ids2 = jax.random.split(key, 5)

    # nn.Embedding default init ~ N(0,1); padding_idx=0 row zeroed.
    word_emb = jax.random.normal(k_w, (V, H), dtype=jnp.float32)
    word_emb = word_emb.at[0].set(0.0)
    # Unused in forward, initialized only to mirror __init__:
    pos_emb = jax.random.normal(k_p, (P, H), dtype=jnp.float32).at[0].set(0.0)
    tok_type_emb = jax.random.normal(k_t, (T, H), dtype=jnp.float32).at[0].set(0.0)

    # LayerNorm default init: weight=1, bias=0.
    gamma = jnp.ones((H,), dtype=jnp.float32)
    beta = jnp.zeros((H,), dtype=jnp.float32)

    # Case 1: default tile size (single tile covers all 16 tokens).
    input_ids = jax.random.randint(k_ids, (B, S), 0, V, dtype=jnp.int32)
    out = jax.block_until_ready(
        bert_embeddings_dense(input_ids, word_emb, gamma, beta))
    ref = _reference(input_ids, word_emb, gamma, beta)
    assert out.shape == (B, S, H)
    assert jnp.allclose(out, ref, atol=1e-5, rtol=1e-5), "mismatch (case 1)"

    # Case 2: multiple tiles + padded remainder (B*S=14, tile=8 -> pad to 16).
    input_ids2 = jax.random.randint(k_ids2, (2, 7), 0, V, dtype=jnp.int32)
    out2 = jax.block_until_ready(
        bert_embeddings_dense(input_ids2, word_emb, gamma, beta,
                              tokens_per_tile=8))
    ref2 = _reference(input_ids2, word_emb, gamma, beta)
    assert out2.shape == (2, 7, H)
    assert jnp.allclose(out2, ref2, atol=1e-5, rtol=1e-5), "mismatch (case 2)"

    print("KERNEL_OK")
</pallas_src>

<mosaic_0001>
module attributes {stable_mosaic.version = 11 : i64} {
  func.func @_embed_layernorm_kernel(%arg0: i32, %arg1: memref<16xi32, #tpu.memory_space<smem>>, %arg2: memref<64x32xf32, #tpu.memory_space<any>>, %arg3: memref<1x32xf32, #tpu.memory_space<vmem>>, %arg4: memref<1x32xf32, #tpu.memory_space<vmem>>, %arg5: memref<16x32xf32, #tpu.memory_space<vmem>>, %arg6: memref<16x32xf32, #tpu.memory_space<vmem>>, %arg7: memref<!tpu.dma_semaphore, #tpu.memory_space<semaphore_mem>>) attributes {dimension_semantics = [#tpu.dimension_semantics<parallel>], iteration_bounds = array<i64: 1>, scalar_prefetch = 1 : i64, scratch_operands = 2 : i64, tpu.core_type = #tpu.core_type<tc>, window_params = [{}, {pipeline_mode = #tpu.pipeline_mode<synchronous>, transform_indices = @transform_1, window_bounds = array<i64: 1, 32>}, {pipeline_mode = #tpu.pipeline_mode<synchronous>, transform_indices = @transform_2, window_bounds = array<i64: 1, 32>}, {transform_indices = @transform_3, window_bounds = array<i64: 16, 32>}]} {
    %c16_i32 = arith.constant 16 : i32
    %0 = arith.muli %arg0, %c16_i32 : i32
    %c0_i32 = arith.constant 0 : i32
    %c16_i32_0 = arith.constant 16 : i32
    %1 = arith.addi %c0_i32, %c16_i32_0 : i32
    %c1_i32 = arith.constant 1 : i32
    scf.for %arg8 = %c0_i32 to %1 step %c1_i32  : i32 {
      %c1_i32_17 = arith.constant 1 : i32
      %27 = arith.muli %arg8, %c1_i32_17 : i32
      %c0_i32_18 = arith.constant 0 : i32
      %28 = arith.addi %c0_i32_18, %27 : i32
      %29 = arith.addi %0, %28 : i32
      %30 = arith.index_cast %29 : i32 to index
      %31 = memref.load %arg1[%30] : memref<16xi32, #tpu.memory_space<smem>>
      %c0_i32_19 = arith.constant 0 : i32
      %32 = tpu.memref_slice %arg2[%31, %c0_i32_19] : memref<64x32xf32, #tpu.memory_space<any>> -> memref<1x32xf32, #tpu.memory_space<any>>
      %c0_i32_20 = arith.constant 0 : i32
      %33 = tpu.memref_slice %arg6[%28, %c0_i32_20] : memref<16x32xf32, #tpu.memory_space<vmem>> -> memref<1x32xf32, #tpu.memory_space<vmem>>
      tpu.enqueue_dma source(%32 : memref<1x32xf32, #tpu.memory_space<any>>) target(%33 : memref<1x32xf32, #tpu.memory_space<vmem>>) target_semaphore(%arg7 : memref<!tpu.dma_semaphore, #tpu.memory_space<semaphore_mem>>)
    }
    %c16_i32_1 = arith.constant 16 : i32
    %c0_i32_2 = arith.constant 0 : i32
    %c16_i32_3 = arith.constant 16 : i32
    %2 = arith.addi %c0_i32_2, %c16_i32_3 : i32
    %c1_i32_4 = arith.constant 1 : i32
    scf.for %arg8 = %c0_i32_2 to %2 step %c1_i32_4  : i32 {
      %c1_i32_17 = arith.constant 1 : i32
      %27 = arith.muli %arg8, %c1_i32_17 : i32
      %c0_i32_18 = arith.constant 0 : i32
      %28 = arith.addi %c0_i32_18, %27 : i32
      %c0_i32_19 = arith.constant 0 : i32
      %c0_i32_20 = arith.constant 0 : i32
      %29 = tpu.memref_slice %arg2[%c0_i32_19, %c0_i32_20] : memref<64x32xf32, #tpu.memory_space<any>> -> memref<1x32xf32, #tpu.memory_space<any>>
      %c0_i32_21 = arith.constant 0 : i32
      %30 = tpu.memref_slice %arg6[%28, %c0_i32_21] : memref<16x32xf32, #tpu.memory_space<vmem>> -> memref<1x32xf32, #tpu.memory_space<vmem>>
      tpu.wait_dma2 semaphore(%arg7 : memref<!tpu.dma_semaphore, #tpu.memory_space<semaphore_mem>>) src(%29 : memref<1x32xf32, #tpu.memory_space<any>>) dst(%30 : memref<1x32xf32, #tpu.memory_space<vmem>>)
    }
    %c16_i32_5 = arith.constant 16 : i32
    %c0 = arith.constant 0 : index
    %c0_6 = arith.constant 0 : index
    %3 = vector.load %arg6[%c0, %c0_6] : memref<16x32xf32, #tpu.memory_space<vmem>>, vector<16x32xf32>
    %cst = arith.constant dense<0.000000e+00> : vector<16xf32>
    %4 = vector.multi_reduction <add>, %3, %cst [1] : vector<16x32xf32> to vector<16xf32>
    %5 = vector.shape_cast %4 : vector<16xf32> to vector<16x1xf32>
    %cst_7 = arith.constant 3.200000e+01 : f32
    %6 = vector.broadcast %cst_7 : f32 to vector<16x1xf32>
    %7 = arith.divf %5, %6 : vector<16x1xf32>
    %8 = vector.broadcast %7 : vector<16x1xf32> to vector<16x32xf32>
    %9 = arith.subf %3, %8 : vector<16x32xf32>
    %10 = arith.mulf %9, %9 : vector<16x32xf32>
    %cst_8 = arith.constant dense<0.000000e+00> : vector<16xf32>
    %11 = vector.multi_reduction <add>, %10, %cst_8 [1] : vector<16x32xf32> to vector<16xf32>
    %12 = vector.shape_cast %11 : vector<16xf32> to vector<16x1xf32>
    %cst_9 = arith.constant 3.200000e+01 : f32
    %13 = vector.broadcast %cst_9 : f32 to vector<16x1xf32>
    %14 = arith.divf %12, %13 : vector<16x1xf32>
    %cst_10 = arith.constant 9.99999996E-13 : f32
    %15 = vector.broadcast %cst_10 : f32 to vector<16x1xf32>
    %16 = arith.addf %14, %15 : vector<16x1xf32>
    %17 = math.rsqrt %16 : vector<16x1xf32>
    %18 = vector.broadcast %17 : vector<16x1xf32> to vector<16x32xf32>
    %19 = arith.mulf %9, %18 : vector<16x32xf32>
    %c0_11 = arith.constant 0 : index
    %c0_12 = arith.constant 0 : index
    %20 = vector.load %arg3[%c0_11, %c0_12] : memref<1x32xf32, #tpu.memory_space<vmem>>, vector<1x32xf32>
    %21 = vector.broadcast %20 : vector<1x32xf32> to vector<16x32xf32>
    %22 = arith.mulf %19, %21 : vector<16x32xf32>
    %c0_13 = arith.constant 0 : index
    %c0_14 = arith.constant 0 : index
    %23 = vector.load %arg4[%c0_13, %c0_14] : memref<1x32xf32, #tpu.memory_space<vmem>>, vector<1x32xf32>
    %24 = vector.broadcast %23 : vector<1x32xf32> to vector<16x32xf32>
    %25 = arith.addf %22, %24 : vector<16x32xf32>
    %c0_15 = arith.constant 0 : index
    %c0_16 = arith.constant 0 : index
    %26 = vector.load %arg5[%c0_15, %c0_16] : memref<16x32xf32, #tpu.memory_space<vmem>>, vector<16x32xf32>
    tpu.vector_store %arg5[%c0_15, %c0_16], %25 {strides = array<i32>} : memref<16x32xf32, #tpu.memory_space<vmem>>, vector<16x32xf32>,
    return
  }
  func.func @transform_1(%arg0: i32, %arg1: memref<16xi32, #tpu.memory_space<smem>>) -> (i32, i32) {
    %c0_i32 = arith.constant 0 : i32
    %c0_i32_0 = arith.constant 0 : i32
    %c0_i32_1 = arith.constant 0 : i32
    return %c0_i32, %c0_i32_0 : i32, i32
  }
  func.func @transform_2(%arg0: i32, %arg1: memref<16xi32, #tpu.memory_space<smem>>) -> (i32, i32) {
    %c0_i32 = arith.constant 0 : i32
    %c0_i32_0 = arith.constant 0 : i32
    %c0_i32_1 = arith.constant 0 : i32
    return %c0_i32, %c0_i32_0 : i32, i32
  }
  func.func @transform_3(%arg0: i32, %arg1: memref<16xi32, #tpu.memory_space<smem>>) -> (i32, i32) {
    %c0_i32 = arith.constant 0 : i32
    %c0_i32_0 = arith.constant 0 : i32
    return %arg0, %c0_i32 : i32, i32
  }
}

</mosaic_0001>

<bundles_post_ra>
// kernel: tpu_custom_call.1
= control target key start
LH: loop header
LB: loop body
LE: loop exit
PB: predicated region body
PF: predicated region fallthrough
CT: control target
= control target key end

     0   :  { %s311_s0 = inlined_call_operand.vmem [shape: s32[16], index: 0, kind: input, shape index: {}]   ;;  %s312_s1 = inlined_call_operand.vmem [shape: f32[64,32], index: 1, kind: input, shape index: {}]   ;;  %s313_s2 = inlined_call_operand.vmem [shape: f32[1,32], index: 2, kind: input, shape index: {}]   ;;  %s314_s3 = inlined_call_operand.vmem [shape: f32[1,32], index: 3, kind: input, shape index: {}]   ;;  %s315_s4 = inlined_call_operand.hbm [shape: f32[16,32], index: 4, kind: output, shape index: {}]  }
   0x1   :  { %s9_s17 = sshll.u32 %s311_s0, 4  ;;  %s10_s17 = int_to_ptr.vmem [resolvable:$true] %s9_s17 }
   0x2   :  { %s207_s18 = scalar_lea.vmem %s10_s17, 16  ;;  %p212_p1 = scmp.lt.s32.totalorder %s10_s17, %s10_s17 }
   0x3   :  { %p208_p0 = scmp.ne.s32.totalorder %s10_s17, %s207_s18  ;;  %p213_p2 = scmp.lt.s32.totalorder %s207_s18, %s207_s18 }
   0x5   :  { %p214_p3 = por %p213_p2, %p212_p1 }
   0x7   :  { %p215_p4 = pnand %p214_p3, %p208_p0 }
   0x9   :  { %218 = shalt.err (!%p215_p4)  }
   0xa   :  { %s261_s19 = smov [#allocation5]  }
   0xb   :  { %12 = dma.vmem_to_smem %s10_s17, 16, %s261_s19, [#allocation4] }
   0xc   :  { %247 = dma.done.wait [#allocation4], 16 }
   0xd   :  { %248 = vsyncadd [#allocation4], 4294967280 }
   0xe   :  { %14 = sfence }
   0xf   :  { %15 = vsyncpa [#allocation7], 0  ;;  %s253_s20 = smov 0  }
  0x10 LB: > { %s28_s21 = sld [smem:[#allocation5 + %s255_s20]]  ;;  %s30_s24 = scalar_lea.vmem [#allocation2], %s255_s20  ;;  %s255_s20 = sphi %s253_s20, %s26_s20  }
  0x16   : > { %s29_s23 = scalar_lea.vmem %s312_s1, %s28_s21 }
  0x17   : > { %v49_v0 = vld [vmem:[%s29_s23] sm:$0x1] }
  0x18   : > { %50 = vst [vmem:[%s30_s24] sm:$0x1] %v49_v0 }
  0x19   : > { %76 = vsyncadd [#allocation3], 16  ;;  %s26_s20 = sadd.s32 1, %s255_s20  }
  0x1a   : > { %p23_p5 = scmp.ge.s32.totalorder %s26_s20, 16  }
  0x1b   :  { %s257_s25 = smov (%p23_p5), 0  }
  0x1c   :  { %25 = sbr.rel (!%p23_p5) target bundleno = 16 (0x10), region = 84 }
  0x21 LB: > { %249 = dma.done.wait [#allocation3], 16  ;;  %s259_s25 = sphi %s257_s25, %s82_s25  }
  0x22   : > { %250 = vsyncadd [#allocation3], 4294967280  ;;  %s82_s25 = sadd.s32 1, %s259_s25  }
  0x23   : > { %p79_p6 = scmp.ge.s32.totalorder %s82_s25, 16  }
  0x24   :  { %v86_v1 = vld [vmem:[#allocation2] sm:$0xff] (%p79_p6)  ;;  %vm88_vm0 = vcmask (%p79_p6), 261120   ;;  %v87_v2 = vld [vmem:[#allocation2 + $0x8] sm:$0xff] (%p79_p6)  ;;  %s262_s29 = smov (%p79_p6), [#allocation6]  }
  0x25   :  { %81 = sbr.rel (!%p79_p6) target bundleno = 33 (0x21), region = 95  ;;  %v89_v3 = vsel (%p79_p6), %vm88_vm0, %v86_v1, 0.0  ;;  %v92_v4 = vsel (%p79_p6), %vm88_vm0, %v87_v2, 0.0  ;;  %v180_v22 = vld [vmem:[%s313_s2] ss:$0 sm:$0xff] (%p79_p6)  ;;  %s141_s30 = sshll.u32 (%p79_p6), %s262_s29, 4  ;;  %s142_s30 = int_to_ptr.vmem [resolvable:$true] %s141_s30 }
  0x26   :  { %90 = vadd.xlane.f32.xlu0 (%p79_p6), %v89_v3  ;;  %v181_v24 = vld [vmem:[%s314_s3] ss:$0 sm:$0xff] (%p79_p6)  ;;  %s219_s5 = scalar_lea.vmem (%p79_p6), %s142_s30, 256  ;;  %p224_p8 = scmp.lt.s32.totalorder (%p79_p6), %s142_s30, %s142_s30 }
  0x27   :  { %p220_p7 = scmp.ne.s32.totalorder (%p79_p6), %s142_s30, %s219_s5  ;;  %p225_p9 = scmp.lt.s32.totalorder (%p79_p6), %s219_s5, %s219_s5 }
  0x29   :  { %p226_p10 = por (%p79_p6), %p225_p9, %p224_p8 }
  0x2a   :  { %93 = vadd.xlane.f32.xlu0 %v92_v4 }
  0x2b   :  { %p227_p11 = pnand %p226_p10, %p220_p7 }
  0xaf   :  { %v91_v5 = vpop.xlane.xlu0 %90 }
  0xb0   :  { %v96_v6 = vmul.f32 0.03125, %v91_v5 }
  0xb2   :  { %v98_v7 = vsub.f32 %v86_v1, %v96_v6 }
  0xb3   :  { %v94_v8 = vpop.xlane.xlu0 %93 }
  0xb4   :  { %v97_v9 = vmul.f32 0.03125, %v94_v8  ;;  %v100_v10 = vmul.f32 %v98_v7, %v98_v7 }
  0xb6   :  { %v99_v11 = vsub.f32 %v87_v2, %v97_v9  ;;  %v102_v12 = vsel %vm88_vm0, %v100_v10, 0.0 }
  0xb7   :  { %103 = vadd.xlane.f32.xlu1 %v102_v12 }
  0xb8   :  { %v101_v13 = vmul.f32 %v99_v11, %v99_v11 }
  0xba   :  { %v105_v14 = vsel %vm88_vm0, %v101_v13, 0.0 }
  0xbb   :  { %106 = vadd.xlane.f32.xlu1 %v105_v14 }
 0x140   :  { %v104_v15 = vpop.xlane.xlu1 %103 }
 0x141   :  { %v108_v16 = vmul.f32 0.03125, %v104_v15 }
 0x143   :  { %v110_v17 = vadd.f32 1e-12, %v108_v16 }
 0x144   :  { %v107_v18 = vpop.xlane.xlu1 %106 }
 0x145   :  { %203 = vrsqrt.f32 %v110_v17  ;;  %v109_v19 = vmul.f32 0.03125, %v107_v18 }
 0x147   :  { %v111_v20 = vadd.f32 1e-12, %v109_v19 }
 0x149   :  { %205 = vrsqrt.f32 %v111_v20 }
 0x152   :  { %v204_v21 = vpop.eup %203 }
 0x153   :  { %v114_v23 = vmul.f32 %v204_v21, %v98_v7 }
 0x155   :  { %v123_v25 = vmul.f32 %v180_v22, %v114_v23 }
 0x156   :  { %v206_v26 = vpop.eup %205 }
 0x157   :  { %v115_v27 = vmul.f32 %v206_v26, %v99_v11  ;;  %v132_v28 = vadd.f32 %v181_v24, %v123_v25 }
 0x159   :  { %v124_v29 = vmul.f32 %v180_v22, %v115_v27  ;;  %134 = vst.msk [vmem:[#allocation6] sm:$0xff] %vm88_vm0, %v132_v28 }
 0x15b   :  { %v133_v30 = vadd.f32 %v181_v24, %v124_v29 }
 0x15d   :  { %135 = vst.msk [vmem:[#allocation6 + $0x8] sm:$0xff] %vm88_vm0, %v133_v30 }
 0x15e   :  { %230 = shalt.err (!%p227_p11)
}
 0x15f   :  { %s263_s2 = smov 128   ;;  %s264_s3 = smov 8  }
 0x160   :  { %147 = dma.vmem_to_hbm [thread:$0]  %s142_s30, 256, %s315_s4, [#allocation7], %s263_s2, %s263_s2, %s264_s3  }
 0x161   :  { %251 = dma.done.wait [#allocation7], 256  }
 0x162   :  { %252 = vsyncadd [#allocation7], 4294967040 }
 0x163   :  { %151 = vsyncpa [#allocation7], 1 }
 0x164   :  { %152 = vsyncmov [#allocation3] }
 0x167   :  { %s153_s8 = vpop.sfrf %152 }
 0x168   :  { %p182_p12 = scmp.ne.s32.totalorder %s153_s8, 0 }
 0x16a   :  { %157 = shalt.err (%p182_p12)  }

</bundles_post_ra>
